<compile_context>
chip_gen: v7x
topology: tpu7x:2x2x1
jax: 0.10.0
libtpu: 0.0.40
codegen_flags: <defaults>
</compile_context>

<pallas_src>
import functools

import jax
import jax.numpy as jnp
from jax.experimental import pallas as pl
from jax.experimental.pallas import tpu as pltpu

LANE = 128      # lane width: last-dim (feature) padding unit
SUBLANE = 8     # sublane: batch-tile granularity
MAX_BM = 256    # largest batch tile (amortizes per-step overhead on v6e/v7x)


def _round_up(n, m):
    return ((n + m - 1) // m) * m


def _choose_bm(batch):
    """Adaptive batch tile: sublane-aligned, and yielding >= 2 grid steps
    whenever the batch allows it (keeps both v7x TensorCores busy via the
    'parallel' dimension semantic) while staying <= MAX_BM rows."""
    b8 = _round_up(batch, SUBLANE)
    if b8 <= SUBLANE:
        return SUBLANE
    for bm in (MAX_BM, 128, 64, 32, 16, 8):
        if pl.cdiv(b8, bm) >= 2:
            return bm
    return SUBLANE


def _vmem_capacity_bytes():
    """Physical VMEM per TensorCore (128 MiB v5e/v6e, 64 MiB v7x)."""
    try:
        return int(pltpu.get_tpu_info().vmem_capacity_bytes)
    except Exception:
        return 64 * 1024 * 1024   # conservative (v7x)


# ----------------------------------------------------------------------------
# Parameter initialization (xavier_uniform weights, zero bias) -- matches
# layer_init_xavier in the PyTorch reference, done deterministically in-script.
# Weights stored pre-transposed as (in, out) so the kernel computes h @ W + b.
# ----------------------------------------------------------------------------
def xavier_uniform(key, fan_in, fan_out, dtype=jnp.float32):
    limit = jnp.sqrt(6.0 / (fan_in + fan_out))
    return jax.random.uniform(key, (fan_in, fan_out), dtype=dtype,
                              minval=-limit, maxval=limit)


def init_vae_params(key, input_units, hidden_units, rep_units):
    """Returns a flat list [(W, b), ...] covering encoder then decoder layers."""
    enc_dims = (input_units,) + tuple(hidden_units) + (rep_units,)
    dec_dims = (rep_units,) + tuple(hidden_units[::-1]) + (input_units,)
    all_dims = list(zip(enc_dims[:-1], enc_dims[1:])) + \
               list(zip(dec_dims[:-1], dec_dims[1:]))
    params = []
    for d_in, d_out in all_dims:
        key, sub = jax.random.split(key)
        w = xavier_uniform(sub, d_in, d_out)
        b = jnp.zeros((1, d_out), dtype=jnp.float32)
        params.append((w, b))
    return params, len(enc_dims) - 1, len(dec_dims) - 1


# ----------------------------------------------------------------------------
# Pallas kernel: fused encoder + decoder MLP chain for one (padded) batch tile.
# All refs are lane-dense (feature dims multiples of 128).  x and weights
# arrive in bf16; biases/activation epilogue stay fp32; MXU accumulates fp32.
# ----------------------------------------------------------------------------
def make_vae_kernel(n_enc, n_dec):
    n_layers = n_enc + n_dec

    def kernel(*refs):
        x_ref = refs[0]
        param_refs = refs[1:1 + 2 * n_layers]
        rep_ref = refs[1 + 2 * n_layers]
        out_ref = refs[2 + 2 * n_layers]

        h = x_ref[...]                          # already bf16 (pre-cast in wrapper)
        acc = None
        for li in range(n_layers):              # static -> fully unrolled
            w = param_refs[2 * li][...]         # (d_in_p, d_out_p) bf16
            b = param_refs[2 * li + 1][...]     # (1, d_out_p)      fp32
            acc = jnp.dot(h, w, preferred_element_type=jnp.float32) + b
            is_head = (li == n_enc - 1) or (li == n_layers - 1)
            if not is_head:                     # ReLU on body layers only
                acc = jnp.maximum(acc, 0.0)
            if li == n_enc - 1:                 # encoder head -> rep output
                rep_ref[...] = acc.astype(rep_ref.dtype)
            if li < n_layers - 1:               # skip dead cast on last layer
                h = acc.astype(jnp.bfloat16)
        out_ref[...] = acc.astype(out_ref.dtype)

    return kernel


# ----------------------------------------------------------------------------
# Wrapper: flattens non-batch dims, zero-pads batch + feature dims to
# lane-dense tiles, keeps every weight/bias fully resident, tiles over the
# (padded) batch, and slices the real outputs back out.
# ----------------------------------------------------------------------------
@functools.partial(jax.jit, static_argnames=("n_enc", "n_dec", "bm"))
def vae_forward(x, flat_params, *, n_enc, n_dec, bm=None):
    if x.ndim > 2:                              # FCNetwork: x.view(B, -1)
        x = x.reshape(x.shape[0], -1)
    B, D_in = x.shape
    n_layers = n_enc + n_dec
    rep_units = flat_params[2 * (n_enc - 1)].shape[1]   # encoder head out-dim

    if bm is None:
        bm = _choose_bm(B)

    # ---- lane/sublane-dense zero padding (layout plumbing, math unchanged) ----
    B_p = _round_up(B, bm)
    D_in_p = _round_up(D_in, LANE)
    rep_p = _round_up(rep_units, LANE)

    # bf16 input: halves x HBM->VMEM DMA bytes and input double-buffer VMEM.
    x_p = jnp.zeros((B_p, D_in_p), jnp.bfloat16).at[:B, :D_in].set(
        x.astype(jnp.bfloat16))

    padded_params = []
    layer_dims = []
    for li in range(n_layers):
        w = flat_params[2 * li]
        b = flat_params[2 * li + 1]
        d_i, d_o = w.shape
        d_ip, d_op = _round_up(d_i, LANE), _round_up(d_o, LANE)
        w_p = jnp.zeros((d_ip, d_op), jnp.bfloat16).at[:d_i, :d_o].set(
            w.astype(jnp.bfloat16))                        # bf16 weights
        b_p = jnp.zeros((1, d_op), jnp.float32).at[:, :d_o].set(
            b.astype(jnp.float32))                         # fp32 biases
        padded_params += [w_p, b_p]
        layer_dims.append((d_ip, d_op))

    kernel = make_vae_kernel(n_enc, n_dec)

    # Input tile: (bm, D_in_p) sliding over the padded batch.
    in_specs = [pl.BlockSpec((bm, D_in_p), lambda i: (i, 0))]
    # Weights/biases: full array, constant block index -> resident across grid.
    for p in padded_params:
        in_specs.append(pl.BlockSpec(p.shape, lambda i: (0, 0)))

    out_specs = [
        pl.BlockSpec((bm, rep_p), lambda i: (i, 0)),
        pl.BlockSpec((bm, D_in_p), lambda i: (i, 0)),
    ]
    out_shape = (
        jax.ShapeDtypeStruct((B_p, rep_p), jnp.float32),
        jax.ShapeDtypeStruct((B_p, D_in_p), jnp.float32),
    )

    # ---- generation-aware VMEM budget derived from the actual footprint ----
    param_bytes = sum(int(p.size) * p.dtype.itemsize for p in padded_params)
    tile_in_bytes = bm * D_in_p * 2                       # bf16 x tile
    tile_out_bytes = bm * (rep_p + D_in_p) * 4            # fp32 output tiles
    widest = max(max(d) for d in layer_dims)
    act_headroom = 4 * bm * widest * 4                    # unrolled fp32 acts
    needed = 2 * (param_bytes + tile_in_bytes + tile_out_bytes) + act_headroom
    vmem_cap = _vmem_capacity_bytes()
    vmem_limit = int(min(max(needed + (4 << 20), 8 << 20), (vmem_cap * 3) // 4))

    flops = 2 * B_p * sum(di * do for di, do in layer_dims)
    bytes_accessed = (
        int(x_p.size) * 2
        + sum(di * do * 2 + do * 4 for di, do in layer_dims)
        + B_p * (rep_p + D_in_p) * 4
    )

    rep_pad, out_pad = pl.pallas_call(
        kernel,
        out_shape=out_shape,
        grid_spec=pltpu.PrefetchScalarGridSpec(
            num_scalar_prefetch=0,
            grid=(B_p // bm,),
            in_specs=in_specs,
            out_specs=out_specs,
        ),
        compiler_params=pltpu.CompilerParams(
            dimension_semantics=("parallel",),   # shards batch tiles on v7x
            vmem_limit_bytes=vmem_limit,
        ),
        cost_estimate=pl.CostEstimate(
            flops=int(flops), transcendentals=0,
            bytes_accessed=int(bytes_accessed)),
    )(x_p, *padded_params)

    # Slice away the zero padding (batch rows + feature columns).
    return rep_pad[:B, :rep_units], out_pad[:B, :D_in]


# ----------------------------------------------------------------------------
# Pure-JAX fp32 reference for verification.
# ----------------------------------------------------------------------------
def vae_reference(x, params, n_enc, n_dec):
    h = x.astype(jnp.float32)
    if h.ndim > 2:
        h = h.reshape(h.shape[0], -1)
    for li in range(n_enc):
        w, b = params[li]
        h = h @ w + b
        if li < n_enc - 1:
            h = jnp.maximum(h, 0.0)
    rep = h
    for li in range(n_dec):
        w, b = params[n_enc + li]
        h = h @ w + b
        if li < n_dec - 1:
            h = jnp.maximum(h, 0.0)
    return rep, h


if __name__ == "__main__":
    # Small shapes consistent with the module: flat features (no conv).
    batch = 16
    input_units = 32
    hidden_units = (64, 32)
    rep_units = 16

    key = jax.random.PRNGKey(0)
    key, kx, kp = jax.random.split(key, 3)

    x = jax.random.normal(kx, (batch, input_units), dtype=jnp.float32)
    params, n_enc, n_dec = init_vae_params(kp, input_units, hidden_units,
                                           rep_units)

    # Flatten params for the pallas_call argument list.
    flat_params = tuple(p for wb in params for p in wb)

    rep, out = vae_forward(x, flat_params, n_enc=n_enc, n_dec=n_dec)
    rep, out = jax.block_until_ready((rep, out))

    rep_ref, out_ref = vae_reference(x, params, n_enc, n_dec)
    assert rep.shape == (batch, rep_units) and out.shape == (batch, input_units)
    # bf16 matmuls with fp32 accumulation -> loosened tolerance vs fp32 ref.
    assert jnp.allclose(rep, rep_ref, atol=3e-2, rtol=3e-2), \
        float(jnp.max(jnp.abs(rep - rep_ref)))
    assert jnp.allclose(out, out_ref, atol=3e-2, rtol=3e-2), \
        float(jnp.max(jnp.abs(out - out_ref)))

    print("KERNEL_OK")
</pallas_src>

<mosaic_0001>
module attributes {stable_mosaic.version = 11 : i64} {
  func.func @kernel(%arg0: i32, %arg1: memref<8x128xbf16, #tpu.memory_space<vmem>>, %arg2: memref<128x128xbf16, #tpu.memory_space<vmem>>, %arg3: memref<1x128xf32, #tpu.memory_space<vmem>>, %arg4: memref<128x128xbf16, #tpu.memory_space<vmem>>, %arg5: memref<1x128xf32, #tpu.memory_space<vmem>>, %arg6: memref<128x128xbf16, #tpu.memory_space<vmem>>, %arg7: memref<1x128xf32, #tpu.memory_space<vmem>>, %arg8: memref<128x128xbf16, #tpu.memory_space<vmem>>, %arg9: memref<1x128xf32, #tpu.memory_space<vmem>>, %arg10: memref<128x128xbf16, #tpu.memory_space<vmem>>, %arg11: memref<1x128xf32, #tpu.memory_space<vmem>>, %arg12: memref<128x128xbf16, #tpu.memory_space<vmem>>, %arg13: memref<1x128xf32, #tpu.memory_space<vmem>>, %arg14: memref<8x128xf32, #tpu.memory_space<vmem>>, %arg15: memref<8x128xf32, #tpu.memory_space<vmem>>) attributes {dimension_semantics = [#tpu.dimension_semantics<parallel>], iteration_bounds = array<i64: 2>, scalar_prefetch = 0 : i64, scratch_operands = 0 : i64, tpu.core_type = #tpu.core_type<tc>, window_params = [{transform_indices = @transform_0, window_bounds = array<i64: 8, 128>}, {pipeline_mode = #tpu.pipeline_mode<synchronous>, transform_indices = @transform_1, window_bounds = array<i64: 128, 128>}, {pipeline_mode = #tpu.pipeline_mode<synchronous>, transform_indices = @transform_2, window_bounds = array<i64: 1, 128>}, {pipeline_mode = #tpu.pipeline_mode<synchronous>, transform_indices = @transform_3, window_bounds = array<i64: 128, 128>}, {pipeline_mode = #tpu.pipeline_mode<synchronous>, transform_indices = @transform_4, window_bounds = array<i64: 1, 128>}, {pipeline_mode = #tpu.pipeline_mode<synchronous>, transform_indices = @transform_5, window_bounds = array<i64: 128, 128>}, {pipeline_mode = #tpu.pipeline_mode<synchronous>, transform_indices = @transform_6, window_bounds = array<i64: 1, 128>}, {pipeline_mode = #tpu.pipeline_mode<synchronous>, transform_indices = @transform_7, window_bounds = array<i64: 128, 128>}, {pipeline_mode = #tpu.pipeline_mode<synchronous>, transform_indices = @transform_8, window_bounds = array<i64: 1, 128>}, {pipeline_mode = #tpu.pipeline_mode<synchronous>, transform_indices = @transform_9, window_bounds = array<i64: 128, 128>}, {pipeline_mode = #tpu.pipeline_mode<synchronous>, transform_indices = @transform_10, window_bounds = array<i64: 1, 128>}, {pipeline_mode = #tpu.pipeline_mode<synchronous>, transform_indices = @transform_11, window_bounds = array<i64: 128, 128>}, {pipeline_mode = #tpu.pipeline_mode<synchronous>, transform_indices = @transform_12, window_bounds = array<i64: 1, 128>}, {transform_indices = @transform_13, window_bounds = array<i64: 8, 128>}, {transform_indices = @transform_14, window_bounds = array<i64: 8, 128>}]} {
    %c0 = arith.constant 0 : index
    %c0_0 = arith.constant 0 : index
    %0 = vector.load %arg1[%c0, %c0_0] : memref<8x128xbf16, #tpu.memory_space<vmem>>, vector<8x128xbf16>
    %c0_1 = arith.constant 0 : index
    %c0_2 = arith.constant 0 : index
    %1 = vector.load %arg2[%c0_1, %c0_2] : memref<128x128xbf16, #tpu.memory_space<vmem>>, vector<128x128xbf16>
    %c0_3 = arith.constant 0 : index
    %c0_4 = arith.constant 0 : index
    %2 = vector.load %arg3[%c0_3, %c0_4] : memref<1x128xf32, #tpu.memory_space<vmem>>, vector<1x128xf32>
    %cst = arith.constant dense<0.000000e+00> : vector<8x128xf32>
    %3 = tpu.matmul %0, %1, %cst {dimension_numbers = #tpu.dot_dimension_numbers<[1], [0], [0], [1], [0, 0, 1, 1], [], []>} : vector<8x128xbf16>, vector<128x128xbf16>, vector<8x128xf32> -> vector<8x128xf32>
    %4 = vector.broadcast %2 : vector<1x128xf32> to vector<8x128xf32>
    %5 = arith.addf %3, %4 : vector<8x128xf32>
    %cst_5 = arith.constant 0.000000e+00 : f32
    %6 = vector.broadcast %cst_5 : f32 to vector<8x128xf32>
    %7 = arith.maximumf %5, %6 : vector<8x128xf32>
    %8 = arith.truncf %7 : vector<8x128xf32> to vector<8x128xbf16>
    %c0_6 = arith.constant 0 : index
    %c0_7 = arith.constant 0 : index
    %9 = vector.load %arg4[%c0_6, %c0_7] : memref<128x128xbf16, #tpu.memory_space<vmem>>, vector<128x128xbf16>
    %c0_8 = arith.constant 0 : index
    %c0_9 = arith.constant 0 : index
    %10 = vector.load %arg5[%c0_8, %c0_9] : memref<1x128xf32, #tpu.memory_space<vmem>>, vector<1x128xf32>
    %cst_10 = arith.constant dense<0.000000e+00> : vector<8x128xf32>
    %11 = tpu.matmul %8, %9, %cst_10 {dimension_numbers = #tpu.dot_dimension_numbers<[1], [0], [0], [1], [0, 0, 1, 1], [], []>} : vector<8x128xbf16>, vector<128x128xbf16>, vector<8x128xf32> -> vector<8x128xf32>
    %12 = vector.broadcast %10 : vector<1x128xf32> to vector<8x128xf32>
    %13 = arith.addf %11, %12 : vector<8x128xf32>
    %cst_11 = arith.constant 0.000000e+00 : f32
    %14 = vector.broadcast %cst_11 : f32 to vector<8x128xf32>
    %15 = arith.maximumf %13, %14 : vector<8x128xf32>
    %16 = arith.truncf %15 : vector<8x128xf32> to vector<8x128xbf16>
    %c0_12 = arith.constant 0 : index
    %c0_13 = arith.constant 0 : index
    %17 = vector.load %arg6[%c0_12, %c0_13] : memref<128x128xbf16, #tpu.memory_space<vmem>>, vector<128x128xbf16>
    %c0_14 = arith.constant 0 : index
    %c0_15 = arith.constant 0 : index
    %18 = vector.load %arg7[%c0_14, %c0_15] : memref<1x128xf32, #tpu.memory_space<vmem>>, vector<1x128xf32>
    %cst_16 = arith.constant dense<0.000000e+00> : vector<8x128xf32>
    %19 = tpu.matmul %16, %17, %cst_16 {dimension_numbers = #tpu.dot_dimension_numbers<[1], [0], [0], [1], [0, 0, 1, 1], [], []>} : vector<8x128xbf16>, vector<128x128xbf16>, vector<8x128xf32> -> vector<8x128xf32>
    %20 = vector.broadcast %18 : vector<1x128xf32> to vector<8x128xf32>
    %21 = arith.addf %19, %20 : vector<8x128xf32>
    %c0_17 = arith.constant 0 : index
    %c0_18 = arith.constant 0 : index
    %22 = vector.load %arg14[%c0_17, %c0_18] : memref<8x128xf32, #tpu.memory_space<vmem>>, vector<8x128xf32>
    tpu.vector_store %arg14[%c0_17, %c0_18], %21 {strides = array<i32>} : memref<8x128xf32, #tpu.memory_space<vmem>>, vector<8x128xf32>,
    %23 = arith.truncf %21 : vector<8x128xf32> to vector<8x128xbf16>
    %c0_19 = arith.constant 0 : index
    %c0_20 = arith.constant 0 : index
    %24 = vector.load %arg8[%c0_19, %c0_20] : memref<128x128xbf16, #tpu.memory_space<vmem>>, vector<128x128xbf16>
    %c0_21 = arith.constant 0 : index
    %c0_22 = arith.constant 0 : index
    %25 = vector.load %arg9[%c0_21, %c0_22] : memref<1x128xf32, #tpu.memory_space<vmem>>, vector<1x128xf32>
    %cst_23 = arith.constant dense<0.000000e+00> : vector<8x128xf32>
    %26 = tpu.matmul %23, %24, %cst_23 {dimension_numbers = #tpu.dot_dimension_numbers<[1], [0], [0], [1], [0, 0, 1, 1], [], []>} : vector<8x128xbf16>, vector<128x128xbf16>, vector<8x128xf32> -> vector<8x128xf32>
    %27 = vector.broadcast %25 : vector<1x128xf32> to vector<8x128xf32>
    %28 = arith.addf %26, %27 : vector<8x128xf32>
    %cst_24 = arith.constant 0.000000e+00 : f32
    %29 = vector.broadcast %cst_24 : f32 to vector<8x128xf32>
    %30 = arith.maximumf %28, %29 : vector<8x128xf32>
    %31 = arith.truncf %30 : vector<8x128xf32> to vector<8x128xbf16>
    %c0_25 = arith.constant 0 : index
    %c0_26 = arith.constant 0 : index
    %32 = vector.load %arg10[%c0_25, %c0_26] : memref<128x128xbf16, #tpu.memory_space<vmem>>, vector<128x128xbf16>
    %c0_27 = arith.constant 0 : index
    %c0_28 = arith.constant 0 : index
    %33 = vector.load %arg11[%c0_27, %c0_28] : memref<1x128xf32, #tpu.memory_space<vmem>>, vector<1x128xf32>
    %cst_29 = arith.constant dense<0.000000e+00> : vector<8x128xf32>
    %34 = tpu.matmul %31, %32, %cst_29 {dimension_numbers = #tpu.dot_dimension_numbers<[1], [0], [0], [1], [0, 0, 1, 1], [], []>} : vector<8x128xbf16>, vector<128x128xbf16>, vector<8x128xf32> -> vector<8x128xf32>
    %35 = vector.broadcast %33 : vector<1x128xf32> to vector<8x128xf32>
    %36 = arith.addf %34, %35 : vector<8x128xf32>
    %cst_30 = arith.constant 0.000000e+00 : f32
    %37 = vector.broadcast %cst_30 : f32 to vector<8x128xf32>
    %38 = arith.maximumf %36, %37 : vector<8x128xf32>
    %39 = arith.truncf %38 : vector<8x128xf32> to vector<8x128xbf16>
    %c0_31 = arith.constant 0 : index
    %c0_32 = arith.constant 0 : index
    %40 = vector.load %arg12[%c0_31, %c0_32] : memref<128x128xbf16, #tpu.memory_space<vmem>>, vector<128x128xbf16>
    %c0_33 = arith.constant 0 : index
    %c0_34 = arith.constant 0 : index
    %41 = vector.load %arg13[%c0_33, %c0_34] : memref<1x128xf32, #tpu.memory_space<vmem>>, vector<1x128xf32>
    %cst_35 = arith.constant dense<0.000000e+00> : vector<8x128xf32>
    %42 = tpu.matmul %39, %40, %cst_35 {dimension_numbers = #tpu.dot_dimension_numbers<[1], [0], [0], [1], [0, 0, 1, 1], [], []>} : vector<8x128xbf16>, vector<128x128xbf16>, vector<8x128xf32> -> vector<8x128xf32>
    %43 = vector.broadcast %41 : vector<1x128xf32> to vector<8x128xf32>
    %44 = arith.addf %42, %43 : vector<8x128xf32>
    %c0_36 = arith.constant 0 : index
    %c0_37 = arith.constant 0 : index
    %45 = vector.load %arg15[%c0_36, %c0_37] : memref<8x128xf32, #tpu.memory_space<vmem>>, vector<8x128xf32>
    tpu.vector_store %arg15[%c0_36, %c0_37], %44 {strides = array<i32>} : memref<8x128xf32, #tpu.memory_space<vmem>>, vector<8x128xf32>,
    return
  }
  func.func @transform_0(%arg0: i32) -> (i32, i32) {
    %c0_i32 = arith.constant 0 : i32
    %c0_i32_0 = arith.constant 0 : i32
    return %arg0, %c0_i32 : i32, i32
  }
  func.func @transform_1(%arg0: i32) -> (i32, i32) {
    %c0_i32 = arith.constant 0 : i32
    %c0_i32_0 = arith.constant 0 : i32
    %c0_i32_1 = arith.constant 0 : i32
    return %c0_i32, %c0_i32_0 : i32, i32
  }
  func.func @transform_2(%arg0: i32) -> (i32, i32) {
    %c0_i32 = arith.constant 0 : i32
    %c0_i32_0 = arith.constant 0 : i32
    %c0_i32_1 = arith.constant 0 : i32
    return %c0_i32, %c0_i32_0 : i32, i32
  }
  func.func @transform_3(%arg0: i32) -> (i32, i32) {
    %c0_i32 = arith.constant 0 : i32
    %c0_i32_0 = arith.constant 0 : i32
    %c0_i32_1 = arith.constant 0 : i32
    return %c0_i32, %c0_i32_0 : i32, i32
  }
  func.func @transform_4(%arg0: i32) -> (i32, i32) {
    %c0_i32 = arith.constant 0 : i32
    %c0_i32_0 = arith.constant 0 : i32
    %c0_i32_1 = arith.constant 0 : i32
    return %c0_i32, %c0_i32_0 : i32, i32
  }
  func.func @transform_5(%arg0: i32) -> (i32, i32) {
    %c0_i32 = arith.constant 0 : i32
    %c0_i32_0 = arith.constant 0 : i32
    %c0_i32_1 = arith.constant 0 : i32
    return %c0_i32, %c0_i32_0 : i32, i32
  }
  func.func @transform_6(%arg0: i32) -> (i32, i32) {
    %c0_i32 = arith.constant 0 : i32
    %c0_i32_0 = arith.constant 0 : i32
    %c0_i32_1 = arith.constant 0 : i32
    return %c0_i32, %c0_i32_0 : i32, i32
  }
  func.func @transform_7(%arg0: i32) -> (i32, i32) {
    %c0_i32 = arith.constant 0 : i32
    %c0_i32_0 = arith.constant 0 : i32
    %c0_i32_1 = arith.constant 0 : i32
    return %c0_i32, %c0_i32_0 : i32, i32
  }
  func.func @transform_8(%arg0: i32) -> (i32, i32) {
    %c0_i32 = arith.constant 0 : i32
    %c0_i32_0 = arith.constant 0 : i32
    %c0_i32_1 = arith.constant 0 : i32
    return %c0_i32, %c0_i32_0 : i32, i32
  }
  func.func @transform_9(%arg0: i32) -> (i32, i32) {
    %c0_i32 = arith.constant 0 : i32
    %c0_i32_0 = arith.constant 0 : i32
    %c0_i32_1 = arith.constant 0 : i32
    return %c0_i32, %c0_i32_0 : i32, i32
  }
  func.func @transform_10(%arg0: i32) -> (i32, i32) {
    %c0_i32 = arith.constant 0 : i32
    %c0_i32_0 = arith.constant 0 : i32
    %c0_i32_1 = arith.constant 0 : i32
    return %c0_i32, %c0_i32_0 : i32, i32
  }
  func.func @transform_11(%arg0: i32) -> (i32, i32) {
    %c0_i32 = arith.constant 0 : i32
    %c0_i32_0 = arith.constant 0 : i32
    %c0_i32_1 = arith.constant 0 : i32
    return %c0_i32, %c0_i32_0 : i32, i32
  }
  func.func @transform_12(%arg0: i32) -> (i32, i32) {
    %c0_i32 = arith.constant 0 : i32
    %c0_i32_0 = arith.constant 0 : i32
    %c0_i32_1 = arith.constant 0 : i32
    return %c0_i32, %c0_i32_0 : i32, i32
  }
  func.func @transform_13(%arg0: i32) -> (i32, i32) {
    %c0_i32 = arith.constant 0 : i32
    %c0_i32_0 = arith.constant 0 : i32
    return %arg0, %c0_i32 : i32, i32
  }
  func.func @transform_14(%arg0: i32) -> (i32, i32) {
    %c0_i32 = arith.constant 0 : i32
    %c0_i32_0 = arith.constant 0 : i32
    return %arg0, %c0_i32 : i32, i32
  }
}

</mosaic_0001>

<bundles_post_ra>
// kernel: vae_forward.1
= control target key start
LH: loop header
LB: loop body
LE: loop exit
PB: predicated region body
PF: predicated region fallthrough
CT: control target
= control target key end

     0   :  { %s2147_s0 = inlined_call_operand.vmem [shape: bf16[16,128], index: 0, kind: input, shape index: {}]   ;;  %s2148_s1 = inlined_call_operand.vmem [shape: bf16[128,128], index: 1, kind: input, shape index: {}]   ;;  %s2149_s2 = inlined_call_operand.vmem [shape: f32[1,128], index: 2, kind: input, shape index: {}]   ;;  %s2150_s3 = inlined_call_operand.vmem [shape: bf16[128,128], index: 3, kind: input, shape index: {}]   ;;  %s2151_s4 = inlined_call_operand.vmem [shape: f32[1,128], index: 4, kind: input, shape index: {}]   ;;  %s2152_s5 = inlined_call_operand.vmem [shape: bf16[128,128], index: 5, kind: input, shape index: {}]   ;;  %s2153_s6 = inlined_call_operand.vmem [shape: f32[1,128], index: 6, kind: input, shape index: {}]   ;;  %s2154_s7 = inlined_call_operand.vmem [shape: bf16[128,128], index: 7, kind: input, shape index: {}]   ;;  %s2155_s8 = inlined_call_operand.vmem [shape: f32[1,128], index: 8, kind: input, shape index: {}]   ;;  %s2156_s9 = inlined_call_operand.vmem [shape: bf16[128,128], index: 9, kind: input, shape index: {}]   ;;  %s2157_s10 = inlined_call_operand.vmem [shape: f32[1,128], index: 10, kind: input, shape index: {}]   ;;  %s2158_s11 = inlined_call_operand.vmem [shape: bf16[128,128], index: 11, kind: input, shape index: {}]   ;;  %s2159_s12 = inlined_call_operand.vmem [shape: f32[1,128], index: 12, kind: input, shape index: {}]   ;;  %s2160_s13 = inlined_call_operand.hbm [shape: f32[16,128], index: 13, kind: output, shape index: {0}]   ;;  %s2161_s14 = inlined_call_operand.hbm [shape: f32[16,128], index: 14, kind: output, shape index: {1}]  }
   0x1   :  { %2167 = sst [smem:[#allocation11_spill]] %s2147_s0 }
   0x2   :  { %2168 = sst [smem:[#allocation12_spill]] %s2148_s1 }
   0x3   :  { %2169 = sst [smem:[#allocation13_spill]] %s2149_s2 }
   0x4   :  { %20 = vsyncpa [#allocation3], 0 }
   0x5   :  { %22 = vsyncpa [#allocation3 + $0x1], 0 }
   0x6   :  { %23 = vsyncpa [#allocation5], 0 }
   0x7   :  { %25 = vsyncpa [#allocation5 + $0x1], 0  ;;  %s1786_s29 = smov 0   ;;  %s1788_s30 = smov 0  }
   0x8   :  { %s1790_s15 = smov 0   ;;  %s1792_s16 = smov 0  }
   0x9 LB: > { %2170 = sst [smem:[#allocation8_spill]] %s1701_s15  ;;  %s1807_s17 = sadd.s32 4294967295, %s1705_s16   ;;  %s1705_s16 = sphi %s1792_s16, %s2180_s16   ;;  %s1701_s15 = sphi %s1790_s15, %s2182_s15   ;;  %s1697_s30 = sphi %s1788_s30, %s2184_s30   ;;  %s1693_s29 = sphi %s1786_s29, %s2183_s29  }
   0xa   : > { %s1276_s18 = sadd.s32 4294967294, %s1705_s16   ;;  %s1811_s19 = sadd.s32 1, %s1705_s16  }
   0xb   : > { %2171 = sst [smem:[#allocation9_spill]] %s1811_s19  ;;  %s316_s20 = sadd.s32 1, %s1701_s15 }
   0xc   : > { %s313_s21 = ssub.s32 %s1705_s16, %s1811_s19  ;;  %p326_p0 = scmp.ne.s32.totalorder %s1701_s15, %s1697_s30 }
   0xd   : > { %p314_p1 = scmp.eq.s32.totalorder %s313_s21, 0  ;;  %p327_p2 = scmp.eq.s32.totalorder %s1807_s17, 1 }
   0xe   : > { %p332_p3 = scmp.ne.s32.totalorder %s1697_s30, %s1693_s29  ;;  %p333_p4 = scmp.eq.s32.totalorder %s1276_s18, 1 }
   0xf   : > { %s1822_s22 = scalar_select %p314_p1, %s1701_s15, %s316_s20  }
  0x10   : > { %p1824_p5 = por %p327_p2, %p326_p0  ;;  %p1828_p6 = por %p333_p4, %p332_p3 }
  0x11   : > { %2172 = sst [smem:[#allocation10_spill]] %s1822_s22  ;;  %p1279_p7 = scmp.ge.s32.totalorder %s1705_s16, 1 }
  0x12   : > { %p420_p8 = scmp.lt.s32.totalorder %s1705_s16, 3 }
  0x14   : > { %p421_p9 = pnand %p1279_p7, %p420_p8 }
  0x15   : > { %s2175_s1 = sld [smem:[#allocation12_spill]] (!%p421_p9)  ;;  %v1707_v1 = vmov (!%p421_p9), 0.0   ;;  %vm1708_vm0 = vmmov (!%p421_p9), 0   ;;  %p470_p10 = scmp.lt.s32.totalorder (!%p421_p9), %s1807_s17, 1  ;;  %v1571_v4 = vld [vmem:[%s2150_s3] sm:$0xff] (!%p421_p9)   ;;  %v1572_v6 = vld [vmem:[%s2150_s3 + $0x8] sm:$0xff] (!%p421_p9)  }
  0x16   : > { %424 = sbr.rel (%p421_p9) target bundleno = 1375 (0x55f), region = 72  ;;  %1397 = vmatprep.subr.bf16.mxu0 (!%p421_p9), %v1707_v1  ;;  %1417 = vmatprep.subr.bf16.mxu1 (!%p421_p9), %v1707_v1  ;;  %v1573_v8 = vld [vmem:[%s2150_s3 + $0x10] sm:$0xff] (!%p421_p9)   ;;  %v1574_v10 = vld [vmem:[%s2150_s3 + $0x18] sm:$0xff] (!%p421_p9)   ;;  %v1575_v12 = vld [vmem:[%s2150_s3 + $0x20] sm:$0xff] (!%p421_p9)   ;;  %s2176_s0 = sld [smem:[#allocation11_spill]] (!%p421_p9) }
  0x17   : > { %1413 = vmatprep.mubr.msk.bf16.mxu0 (!%p421_p9), %vm1708_vm0, %v1707_v1  ;;  %1433 = vmatprep.mubr.msk.bf16.mxu1 (!%p421_p9), %vm1708_vm0, %v1707_v1  ;;  %v1576_v14 = vld [vmem:[%s2150_s3 + $0x28] sm:$0xff] (!%p421_p9)   ;;  %v1577_v16 = vld [vmem:[%s2150_s3 + $0x30] sm:$0xff] (!%p421_p9)   ;;  %v1578_v17 = vld [vmem:[%s2150_s3 + $0x38] sm:$0xff] (!%p421_p9)   ;;  %s2177_s2 = sld [smem:[#allocation13_spill]] (!%p421_p9)  ;;  %s2010_s20 = sand.u32 (!%p421_p9), 1, %s1697_s30  }
  0x18   : > { %1418 = vmatpush3.bf16.msra.mxu1 (!%p421_p9), %v1571_v4  ;;  %v1579_v18 = vld [vmem:[%s2152_s5] sm:$0xff] (!%p421_p9)   ;;  %v1580_v19 = vld [vmem:[%s2152_s5 + $0x8] sm:$0xff] (!%p421_p9)   ;;  %v1581_v20 = vld [vmem:[%s2152_s5 + $0x10] sm:$0xff] (!%p421_p9)   ;;  %s2165_s25 = sshll.u32 (!%p421_p9), %s2010_s20, 3  ;;  %s1709_s27 = smov (!%p421_p9), [#allocation2]  }
  0x19   : > { %1419 = vmatprep.subr.bf16.mxu1 (!%p421_p9), %v1707_v1  ;;  %v1582_v21 = vld [vmem:[%s2152_s5 + $0x18] sm:$0xff] (!%p421_p9)   ;;  %v1583_v22 = vld [vmem:[%s2152_s5 + $0x20] sm:$0xff] (!%p421_p9)   ;;  %v1584_v23 = vld [vmem:[%s2152_s5 + $0x28] sm:$0xff] (!%p421_p9)   ;;  %s2018_s15 = scalar_lea.vmem (!%p421_p9), [#allocation2], %s2165_s25  ;;  %s1154_s25 = scalar_lea.sflag (!%p421_p9), [#allocation3], %s2010_s20 }
  0x1a   : > { %v1585_v32 = vld [vmem:[%s2152_s5 + $0x30] sm:$0xff] (!%p421_p9)   ;;  %v1586_v33 = vld [vmem:[%s2152_s5 + $0x38] sm:$0xff] (!%p421_p9)   ;;  %v1587_v34 = vld [vmem:[%s2154_s7] sm:$0xff] (!%p421_p9)  }
  0x1b   : > { %v1563_v0 = vld [vmem:[%s2175_s1] sm:$0xff] (!%p421_p9)   ;;  %v1564_v2 = vld [vmem:[%s2175_s1 + $0x8] sm:$0xff] (!%p421_p9)   ;;  %v1565_v3 = vld [vmem:[%s2175_s1 + $0x10] sm:$0xff] (!%p421_p9)  }
  0x1c   : > { %1398 = vmatpush3.bf16.msra.mxu0 (!%p421_p9), %v1563_v0  ;;  %v1566_v5 = vld [vmem:[%s2175_s1 + $0x18] sm:$0xff] (!%p421_p9)   ;;  %v1567_v7 = vld [vmem:[%s2175_s1 + $0x20] sm:$0xff] (!%p421_p9)   ;;  %1420 = vmatpush3.bf16.msra.mxu1 (!%p421_p9), %v1572_v6  ;;  %v1568_v9 = vld [vmem:[%s2175_s1 + $0x28] sm:$0xff] (!%p421_p9)  }
  0x1d   : > { %1399 = vmatprep.subr.bf16.mxu0 %v1707_v1  ;;  %s471_s28 = scalar_select %p470_p10, %s1807_s17, 1  ;;  %1421 = vmatprep.subr.bf16.mxu1 %v1707_v1  ;;  %v1569_v11 = vld [vmem:[%s2175_s1 + $0x30] sm:$0xff]   ;;  %v1570_v13 = vld [vmem:[%s2175_s1 + $0x38] sm:$0xff]   ;;  %v1283_v24 = vld [vmem:[%s2177_s2] ss:$0 sm:$0xff] }
  0x1e   : > { %v1588_v35 = vld [vmem:[%s2154_s7 + $0x8] sm:$0xff]   ;;  %v1589_v36 = vld [vmem:[%s2154_s7 + $0x10] sm:$0xff]   ;;  %v1590_v37 = vld [vmem:[%s2154_s7 + $0x18] sm:$0xff]  }
  0x1f   : > { %s1282_s21 = sshll.u32 %s471_s28, 2  ;;  %v1591_v38 = vld [vmem:[%s2154_s7 + $0x20] sm:$0xff]   ;;  %v1592_v39 = vld [vmem:[%s2154_s7 + $0x28] sm:$0xff]   ;;  %v1593_v40 = vld [vmem:[%s2154_s7 + $0x30] sm:$0xff]   ;;  %s1172_s28 = sshll.u32 %s2018_s15, 4  ;;  %s1173_s28 = int_to_ptr.vmem [resolvable:$true] %s1172_s28 }
  0x20   : > { %1400 = vmatpush3.bf16.msra.mxu0 %v1564_v2  ;;  %1422 = vmatpush3.bf16.msra.mxu1 %v1573_v8  ;;  %s473_s22 = scalar_lea.vmem %s2176_s0, %s1282_s21  ;;  %v1292_v41 = vld [vmem:[%s2151_s4] ss:$0 sm:$0xff]  ;;  %v1594_v49 = vld [vmem:[%s2154_s7 + $0x38] sm:$0xff]   ;;  %v1596_v51 = vld [vmem:[%s2156_s9 + $0x8] sm:$0xff]   ;;  %s1611_s26 = scalar_lea.vmem %s1173_s28, 128 }
  0x21   : > { %1401 = vmatprep.subr.bf16.mxu0 %v1707_v1  ;;  %1423 = vmatprep.subr.bf16.mxu1 %v1707_v1  ;;  %v475_v15 = vld [vmem:[%s473_s22] sm:$0xf]  ;;  %v1597_v52 = vld [vmem:[%s2156_s9 + $0x10] sm:$0xff]   ;;  %v1598_v53 = vld [vmem:[%s2156_s9 + $0x18] sm:$0xff]   ;;  %s2166_s22 = sshll.u32 %s1807_s17, 7  ;;  %p1612_p11 = scmp.ne.s32.totalorder %s1173_s28, %s1611_s26 }
  0x22   : > { %v1595_v50 = vld [vmem:[%s2156_s9] sm:$0xff]   ;;  %v1600_v55 = vld [vmem:[%s2156_s9 + $0x28] sm:$0xff]   ;;  %v1601_v63 = vld [vmem:[%s2156_s9 + $0x30] sm:$0xff]   ;;  %s2074_s18 = scalar_lea.hbm %s2160_s13, %s2166_s22  ;;  %s1615_s0 = sshll.u32 %s1709_s27, 4  ;;  %s1616_s0 = int_to_ptr.vmem [resolvable:$false] %s1615_s0 }
  0x23   : > { %v1599_v54 = vld [vmem:[%s2156_s9 + $0x20] sm:$0xff]   ;;  %v1602_v0 = vld [vmem:[%s2156_s9 + $0x38] sm:$0xff]   ;;  %v1605_v4 = vld [vmem:[%s2158_s11 + $0x10] sm:$0xff]   ;;  %p1613_p12 = pnand %p1612_p11, %p1824_p5  ;;  %s1617_s1 = scalar_lea.vmem %s1616_s0, 256 }
  0x24   : > { %1402 = vmatpush3.bf16.msra.mxu0 %v1565_v3  ;;  %1424 = vmatpush3.bf16.msra.mxu1 %v1574_v10  ;;  %v1301_v56 = vld [vmem:[%s2153_s6] ss:$0 sm:$0xff]  ;;  %v1604_v3 = vld [vmem:[%s2158_s11 + $0x8] sm:$0xff]   ;;  %p1618_p0 = scmp.lt.s32.totalorder %s1173_s28, %s1616_s0  ;;  %p1619_p1 = scmp.lt.s32.totalorder %s1617_s1, %s1611_s26 }
  0x25   : > { %1403 = vmatprep.subr.bf16.mxu0 %v1707_v1  ;;  %1425 = vmatprep.subr.bf16.mxu1 %v1707_v1  ;;  %v1603_v2 = vld [vmem:[%s2158_s11] sm:$0xff]   ;;  %p1614_p13 = pneg %p1613_p12 }
  0x26   : > { %v1607_v6 = vld [vmem:[%s2158_s11 + $0x20] sm:$0xff]   ;;  %p1620_p2 = por %p1619_p1, %p1618_p0 }
  0x27   : > { %v1310_v8 = vld [vmem:[%s2155_s8] ss:$0 sm:$0xff] }
  0x28   : > { %1404 = vmatpush3.bf16.msra.mxu0 %v1566_v5  ;;  %1426 = vmatpush3.bf16.msra.mxu1 %v1575_v12  ;;  %v1606_v5 = vld [vmem:[%s2158_s11 + $0x18] sm:$0xff]   ;;  %p1621_p3 = pnand %p1620_p2, %p1614_p13 }
  0x29   : > { %1405 = vmatprep.subr.bf16.mxu0 %v1707_v1  ;;  %1427 = vmatprep.subr.bf16.mxu1 %v1707_v1 }
  0x2c   : > { %1406 = vmatpush3.bf16.msra.mxu0 %v1567_v7  ;;  %1428 = vmatpush3.bf16.msra.mxu1 %v1576_v14  ;;  %v1608_v7 = vld [vmem:[%s2158_s11 + $0x28] sm:$0xff]  }
  0x2d   : > { %1407 = vmatprep.subr.bf16.mxu0 %v1707_v1  ;;  %1429 = vmatprep.subr.bf16.mxu1 %v1707_v1 }
  0x30   : > { %1408 = vmatpush3.bf16.msra.mxu0 %v1568_v9  ;;  %1430 = vmatpush3.bf16.msra.mxu1 %v1577_v16  ;;  %v1609_v16 = vld [vmem:[%s2158_s11 + $0x30] sm:$0xff]  }
  0x31   : > { %1409 = vmatprep.subr.bf16.mxu0 %v1707_v1  ;;  %1431 = vmatprep.subr.bf16.mxu1 %v1707_v1 }
  0x34   : > { %1410 = vmatpush3.bf16.msra.mxu0 %v1569_v11  ;;  %1432 = vmatpush3.bf16.msra.mxu1 %v1578_v17  ;;  %v1610_v17 = vld [vmem:[%s2158_s11 + $0x38] sm:$0xff]  }
  0x35   : > { %1411 = vmatprep.subr.bf16.mxu0 %v1707_v1  ;;  %1457 = vmatprep.subr.bf16.mxu1 %v1707_v1 }
  0x38   : > { %1412 = vmatpush3.bf16.msra.mxu0 %v1570_v13 }
  0x39   : > { %1437 = vmatprep.subr.bf16.mxu0 %v1707_v1 }
  0x3b   : > { %1414 = vmatmul.mubr.bf16.vlgmr.msra.gmra.mrb[0].mxu0 %v475_v15 }
  0x3c   : > { %1453 = vmatprep.mubr.msk.bf16.mxu0 %vm1708_vm0, %v1707_v1  ;;  %1438 = vmatpush3.bf16.msra.mxu0 %v1579_v18  ;;  %v1319_v18 = vld [vmem:[%s2157_s10] ss:$0 sm:$0xff] }
  0x3d   : > { %1439 = vmatprep.subr.bf16.mxu0 %v1707_v1 }
  0x40   : > { %1440 = vmatpush3.bf16.msra.mxu0 %v1580_v19 }
  0x41   : > { %1441 = vmatprep.subr.bf16.mxu0 %v1707_v1 }
  0x44   : > { %1442 = vmatpush3.bf16.msra.mxu0 %v1581_v20 }
  0x45   : > { %1443 = vmatprep.subr.bf16.mxu0 %v1707_v1 }
  0x48   : > { %1444 = vmatpush3.bf16.msra.mxu0 %v1582_v21 }
  0x49   : > { %1445 = vmatprep.subr.bf16.mxu0 %v1707_v1 }
  0x4c   : > { %1446 = vmatpush3.bf16.msra.mxu0 %v1583_v22 }
  0x4d   : > { %1447 = vmatprep.subr.bf16.mxu0 %v1707_v1 }
  0x50   : > { %1448 = vmatpush3.bf16.msra.mxu0 %v1584_v23 }
  0x51   : > { %1449 = vmatprep.subr.bf16.mxu0 %v1707_v1 }
  0x54   : > { %1450 = vmatpush3.bf16.msra.mxu0 %v1585_v32 }
  0x55   : > { %1451 = vmatprep.subr.bf16.mxu0 %v1707_v1 }
  0x58   : > { %1452 = vmatpush3.bf16.msra.mxu0 %v1586_v33 }
  0x59   : > { %1477 = vmatprep.subr.bf16.mxu0 %v1707_v1 }
 0x10e   : > { %v581_v25 = vpop.f32.mrb[0].mxu0 }
 0x10f   : > { %v582_v26 = vadd.f32 %v1283_v24, %v581_v25  ;;  %v1415_v27 = vpop.f32.mrb[1].mxu0 }
 0x110   : > { %v584_v28 = vpop.f32.mrb[2].mxu0 }
 0x111   : > { %v587_v29 = vmax.f32 %v582_v26, 0.0  ;;  %v1416_v30 = vpop.f32.mrb[3].mxu0 }
 0x113   : > { %v588_v31 = vpack.c.bf16 %v587_v29, %v587_v29 }
 0x115   : > { %1434 = vmatmul.mubr.bf16.vlgmr.msra.gmra.mrb[0].mxu1 %v588_v31 }
 0x116   : > { %1473 = vmatprep.mubr.msk.bf16.mxu1 %vm1708_vm0, %v1707_v1  ;;  %1458 = vmatpush3.bf16.msra.mxu1 %v1587_v34 }
 0x117   : > { %1459 = vmatprep.subr.bf16.mxu1 %v1707_v1 }
 0x11a   : > { %1460 = vmatpush3.bf16.msra.mxu1 %v1588_v35 }
 0x11b   : > { %1461 = vmatprep.subr.bf16.mxu1 %v1707_v1 }
 0x11e   : > { %1462 = vmatpush3.bf16.msra.mxu1 %v1589_v36 }
 0x11f   : > { %1463 = vmatprep.subr.bf16.mxu1 %v1707_v1 }
 0x122   : > { %1464 = vmatpush3.bf16.msra.mxu1 %v1590_v37 }
 0x123   : > { %1465 = vmatprep.subr.bf16.mxu1 %v1707_v1 }
 0x126   : > { %1466 = vmatpush3.bf16.msra.mxu1 %v1591_v38 }
 0x127   : > { %1467 = vmatprep.subr.bf16.mxu1 %v1707_v1 }
 0x12a   : > { %1468 = vmatpush3.bf16.msra.mxu1 %v1592_v39 }
 0x12b   : > { %1469 = vmatprep.subr.bf16.mxu1 %v1707_v1 }
 0x12e   : > { %1470 = vmatpush3.bf16.msra.mxu1 %v1593_v40 }
 0x12f   : > { %1471 = vmatprep.subr.bf16.mxu1 %v1707_v1 }
 0x132   : > { %1472 = vmatpush3.bf16.msra.mxu1 %v1594_v49 }
 0x133   : > { %1497 = vmatprep.subr.bf16.mxu1 %v1707_v1 }
 0x1e8   : > { %v694_v42 = vpop.f32.mrb[0].mxu1 }
 0x1e9   : > { %v695_v43 = vadd.f32 %v1292_v41, %v694_v42  ;;  %v1435_v44 = vpop.f32.mrb[1].mxu1 }
 0x1ea   : > { %v697_v45 = vpop.f32.mrb[2].mxu1 }
 0x1eb   : > { %v700_v46 = vmax.f32 %v695_v43, 0.0  ;;  %v1436_v47 = vpop.f32.mrb[3].mxu1 }
 0x1ed   : > { %v701_v48 = vpack.c.bf16 %v700_v46, %v700_v46 }
 0x1ef   : > { %1454 = vmatmul.mubr.bf16.vlgmr.msra.gmra.mrb[4].mxu0 %v701_v48 }
 0x1f0   : > { %1493 = vmatprep.mubr.msk.bf16.mxu0 %vm1708_vm0, %v1707_v1  ;;  %1478 = vmatpush3.bf16.msra.mxu0 %v1595_v50 }
 0x1f1   : > { %1479 = vmatprep.subr.bf16.mxu0 %v1707_v1 }
 0x1f4   : > { %1480 = vmatpush3.bf16.msra.mxu0 %v1596_v51 }
 0x1f5   : > { %1481 = vmatprep.subr.bf16.mxu0 %v1707_v1 }
 0x1f8   : > { %1482 = vmatpush3.bf16.msra.mxu0 %v1597_v52 }
 0x1f9   : > { %1483 = vmatprep.subr.bf16.mxu0 %v1707_v1 }
 0x1fc   : > { %1484 = vmatpush3.bf16.msra.mxu0 %v1598_v53 }
 0x1fd   : > { %1485 = vmatprep.subr.bf16.mxu0 %v1707_v1 }
 0x200   : > { %1486 = vmatpush3.bf16.msra.mxu0 %v1599_v54 }
 0x201   : > { %1487 = vmatprep.subr.bf16.mxu0 %v1707_v1 }
 0x204   : > { %1488 = vmatpush3.bf16.msra.mxu0 %v1600_v55 }
 0x205   : > { %1489 = vmatprep.subr.bf16.mxu0 %v1707_v1 }
 0x208   : > { %1490 = vmatpush3.bf16.msra.mxu0 %v1601_v63 }
 0x209   : > { %1491 = vmatprep.subr.bf16.mxu0 %v1707_v1 }
 0x20c   : > { %1492 = vmatpush3.bf16.msra.mxu0 %v1602_v0 }
 0x2c2   : > { %v807_v57 = vpop.f32.mrb[4].mxu0 }
 0x2c3   : > { %v808_v58 = vadd.f32 %v1301_v56, %v807_v57  ;;  %v1455_v59 = vpop.f32.mrb[5].mxu0 }
 0x2c4   : > { %v810_v60 = vpop.f32.mrb[6].mxu0 }
 0x2c5   : > { %813 = vst [vmem:[%s2018_s15] sm:$0xff] %v808_v58  ;;  %v814_v61 = vpack.c.bf16 %v808_v58, %v808_v58  ;;  %v1456_v62 = vpop.f32.mrb[7].mxu0 }
 0x2c7   : > { %1474 = vmatmul.mubr.bf16.vlgmr.msra.gmra.mrb[4].mxu1 %v814_v61 }
 0x2c8   : > { %1513 = vmatprep.mubr.msk.bf16.mxu1 %vm1708_vm0, %v1707_v1  ;;  %1498 = vmatpush3.bf16.msra.mxu1 %v1603_v2 }
 0x2c9   : > { %1499 = vmatprep.subr.bf16.mxu1 %v1707_v1 }
 0x2cc   : > { %1500 = vmatpush3.bf16.msra.mxu1 %v1604_v3 }
 0x2cd   : > { %1501 = vmatprep.subr.bf16.mxu1 %v1707_v1 }
 0x2d0   : > { %1502 = vmatpush3.bf16.msra.mxu1 %v1605_v4 }
 0x2d1   : > { %1503 = vmatprep.subr.bf16.mxu1 %v1707_v1 }
 0x2d4   : > { %1504 = vmatpush3.bf16.msra.mxu1 %v1606_v5 }
 0x2d5   : > { %1505 = vmatprep.subr.bf16.mxu1 %v1707_v1 }
 0x2d8   : > { %1506 = vmatpush3.bf16.msra.mxu1 %v1607_v6 }
 0x2d9   : > { %1507 = vmatprep.subr.bf16.mxu1 %v1707_v1 }
 0x2dc   : > { %1508 = vmatpush3.bf16.msra.mxu1 %v1608_v7 }
 0x2dd   : > { %1509 = vmatprep.subr.bf16.mxu1 %v1707_v1 }
 0x2e0   : > { %1510 = vmatpush3.bf16.msra.mxu1 %v1609_v16 }
 0x2e1   : > { %1511 = vmatprep.subr.bf16.mxu1 %v1707_v1 }
 0x2e4   : > { %1512 = vmatpush3.bf16.msra.mxu1 %v1610_v17 }
 0x39a   : > { %v920_v9 = vpop.f32.mrb[4].mxu1 }
 0x39b   : > { %v921_v10 = vadd.f32 %v1310_v8, %v920_v9  ;;  %v1475_v11 = vpop.f32.mrb[5].mxu1 }
 0x39c   : > { %v923_v12 = vpop.f32.mrb[6].mxu1 }
 0x39d   : > { %v926_v13 = vmax.f32 %v921_v10, 0.0  ;;  %v1476_v14 = vpop.f32.mrb[7].mxu1 }
 0x39f   : > { %v927_v15 = vpack.c.bf16 %v926_v13, %v926_v13 }
 0x3a1   : > { %1494 = vmatmul.mubr.bf16.vlgmr.msra.gmra.mrb[8].mxu0 %v927_v15 }
 0x474   : > { %v1033_v19 = vpop.f32.mrb[8].mxu0 }
 0x475   : > { %v1034_v20 = vadd.f32 %v1319_v18, %v1033_v19  ;;  %v1495_v21 = vpop.f32.mrb[9].mxu0 }
 0x476   : > { %v1036_v22 = vpop.f32.mrb[10].mxu0 }
 0x477   : > { %v1039_v23 = vmax.f32 %v1034_v20, 0.0  ;;  %v1496_v24 = vpop.f32.mrb[11].mxu0 }
 0x479   : > { %v1040_v25 = vpack.c.bf16 %v1039_v23, %v1039_v23 }
 0x47b   : > { %1514 = vmatmul.mubr.bf16.vlgmr.msra.gmra.mrb[8].mxu1 %v1040_v25 }
 0x47c   : > { %1624 = shalt.err (!%p1621_p3)
}
 0x47d   : > { %s1625_s15 = scalar_lea.hbm %s2074_s18, 128  ;;  %s1629_s27 = scalar_lea.hbm %s2160_s13, 256 }
 0x47e   : > { %p1626_p4 = scmp.ne.s32.totalorder %s2074_s18, %s1625_s15  ;;  %p1630_p9 = scmp.lt.u32.totalorder %s2074_s18, %s2160_s13 }
 0x47f   : > { %p1631_p10 = scmp.lt.u32.totalorder %s1629_s27, %s1625_s15  ;;  %p1633_p12 = scmp.lt.u32.totalorder %s1625_s15, %s2074_s18 }
 0x480   : > { %p1627_p7 = pnand %p1626_p4, %p1824_p5 }
 0x481   : > { %p1632_p11 = por %p1631_p10, %p1630_p9 }
 0x482   : > { %p1628_p8 = pneg %p1627_p7 }
 0x483   : > { %p1634_p13 = por %p1633_p12, %p1632_p11 }
 0x485   : > { %p1635_p0 = pnand %p1634_p13, %p1628_p8 }
 0x487   : > { %1638 = shalt.err (!%p1635_p0)
}
 0x488   : > { %1517 = dma.vmem_to_hbm [thread:$0]  (%p1824_p5), %s1173_s28, 128, %s2074_s18, %s1154_s25   ;;  %v1328_v1 = vld [vmem:[%s2159_s12] ss:$0 sm:$0xff] }
 0x489   : > { %s2178_s22 = sshll.u32 %s2010_s20, 3  ;;  %s2179_s15 = sshll.u32 %s1807_s17, 7 }
 0x48a   : > { %s469_s19 = scalar_lea.vmem [#allocation4], %s2178_s22  ;;  %s2104_s2 = scalar_lea.hbm %s2161_s14, %s2179_s15 }
 0x48b   : > { %s1185_s21 = sshll.u32 %s469_s19, 4  ;;  %s1159_s28 = scalar_lea.sflag [#allocation5], %s2010_s20  ;;  %s2106_s21 = int_to_ptr.vmem [resolvable:$true] %s1185_s21 }
 0x48c   : > { %s1639_s18 = scalar_lea.vmem %s2106_s21, 128  ;;  %s1710_s17 = smov [#allocation4]  }
 0x48d   : > { %p1640_p1 = scmp.ne.s32.totalorder %s2106_s21, %s1639_s18  ;;  %s1643_s25 = sshll.u32 %s1710_s17, 4  ;;  %s1644_s25 = int_to_ptr.vmem [resolvable:$false] %s1643_s25 }
 0x48e   : > { %s1645_s1 = scalar_lea.vmem %s1644_s25, 256  ;;  %p1646_p4 = scmp.lt.s32.totalorder %s2106_s21, %s1644_s25 }
 0x48f   : > { %p1641_p2 = pnand %p1640_p1, %p1824_p5  ;;  %p1647_p7 = scmp.lt.s32.totalorder %s1645_s1, %s1639_s18 }
 0x491   : > { %p1642_p3 = pneg %p1641_p2  ;;  %p1648_p8 = por %p1647_p7, %p1646_p4 }
 0x493   : > { %p1649_p9 = pnand %p1648_p8, %p1642_p3 }
 0x54e   : > { %v1146_v26 = vpop.f32.mrb[8].mxu1 }
 0x54f   : > { %v1147_v27 = vadd.f32 %v1328_v1, %v1146_v26  ;;  %v1515_v28 = vpop.f32.mrb[9].mxu1 }
 0x550   : > { %v1149_v29 = vpop.f32.mrb[10].mxu1 }
 0x551   : > { %1152 = vst [vmem:[%s469_s19] sm:$0xff] %v1147_v27  ;;  %v1516_v30 = vpop.f32.mrb[11].mxu1 }
 0x552   : > { %1652 = shalt.err (!%p1649_p9)
}
 0x553   : > { %s1653_s20 = scalar_lea.hbm %s2104_s2, 128  ;;  %s1657_s19 = scalar_lea.hbm %s2161_s14, 256 }
 0x554   : > { %p1654_p10 = scmp.ne.s32.totalorder %s2104_s2, %s1653_s20  ;;  %p1658_p13 = scmp.lt.u32.totalorder %s2104_s2, %s2161_s14 }
 0x555   : > { %p1659_p0 = scmp.lt.u32.totalorder %s1657_s19, %s1653_s20  ;;  %p1661_p2 = scmp.lt.u32.totalorder %s1653_s20, %s2104_s2 }
 0x556   : > { %p1655_p11 = pnand %p1654_p10, %p1824_p5 }
 0x557   : > { %p1660_p1 = por %p1659_p0, %p1658_p13 }
 0x558   : > { %p1656_p12 = pneg %p1655_p11 }
 0x559   : > { %p1662_p3 = por %p1661_p2, %p1660_p1 }
 0x55b   : > { %p1663_p4 = pnand %p1662_p3, %p1656_p12 }
 0x55d   : > { %1666 = shalt.err (!%p1663_p4)
}
 0x55e   : > { %1518 = dma.vmem_to_hbm [thread:$0]  (%p1824_p5), %s2106_s21, 128, %s2104_s2, %s1159_s28  }
 0x55f PF: > { %p1528_p7 = scmp.ge.s32.totalorder %s1705_s16, 2  ;;  %s1197_s0 = sand.u32 1, %s1693_s29  }
 0x560   : > { %s1198_s18 = scalar_lea.sflag [#allocation3], %s1197_s0 }
 0x561   : > { %p1522_p8 = pnand %p1528_p7, %p1828_p6 }
 0x563   : > { %1684 = dma.done.wait (!%p1522_p8), %s1198_s18, 128  }
 0x564   : > { %1686 = vsyncadd (!%p1522_p8), %s1198_s18, 4294967168  ;;  %s1207_s17 = scalar_lea.sflag [#allocation5], %s1197_s0 }
 0x565   : > { %1688 = dma.done.wait (!%p1522_p8), %s1207_s17, 128  }
 0x566   : > { %1690 = vsyncadd (!%p1522_p8), %s1207_s17, 4294967168  ;;  %s2180_s16 = sld [smem:[#allocation9_spill]]  ;;  %s2181_s23 = sld [smem:[#allocation8_spill]] }
 0x567   : > { %s2182_s15 = sld [smem:[#allocation10_spill]]  ;;  %s2183_s29 = smov %s1697_s30 }
 0x56c   : > { %p28_p5 = scmp.ge.s32.totalorder %s2180_s16, 4   ;;  %s2184_s30 = smov %s2181_s23 }
 0x56e   :  { %30 = sbr.rel (!%p28_p5) target bundleno = 9 (0x9), region = 124 }
 0x575   :  { %1212 = vsyncpa [#allocation3], 1 }
 0x576   :  { %1214 = vsyncpa [#allocation3 + $0x1], 1 }
 0x577   :  { %1215 = vsyncpa [#allocation5], 1 }
 0x578   :  { %1217 = vsyncpa [#allocation5 + $0x1], 1 }

</bundles_post_ra>
